<compile_context>
chip_gen: v7x
topology: tpu7x:2x2x1
jax: 0.10.0
libtpu: 0.0.40
codegen_flags: <defaults>
</compile_context>

<pallas_src>
import math
import functools

import jax
import jax.numpy as jnp
from jax.experimental import pallas as pl
from jax.experimental.pallas import tpu as pltpu


def _round_up(n, m):
    return ((n + m - 1) // m) * m


def gru_ode_kernel(h_ref, wh_ref, bh_ref, out_ref):
    """One batch tile. All operands are lane-dense padded VMEM slabs."""
    h = h_ref[...]
    Hp = out_ref.shape[-1]

    # Single MXU matmul covering all three gates (f32 accumulate) + bias.
    gate_h = jnp.dot(h, wh_ref[...], preferred_element_type=jnp.float32) + bh_ref[...]

    # Gate slices fall on 128-lane boundaries (Hp % 128 == 0) -> no shuffles.
    resetgate = jax.nn.sigmoid(gate_h[:, 0:Hp])
    inputgate = jax.nn.sigmoid(gate_h[:, Hp:2 * Hp])
    newgate = jnp.tanh(resetgate * gate_h[:, 2 * Hp:3 * Hp])

    # hy = (1 - z) * h + z * n, rewritten to save a VPU multiply.
    h_f32 = h.astype(jnp.float32)
    hy = h_f32 + inputgate * (newgate - h_f32)
    out_ref[...] = hy.astype(out_ref.dtype)


def _pad_params(wh, bh, H, Hp):
    # wh (H, 3H) -> (H, 3, H) -> zero-pad -> (Hp, 3*Hp): each gate chunk gets
    # its own 128-aligned slab.
    wh_p = jnp.pad(wh.reshape(H, 3, H),
                   ((0, Hp - H), (0, 0), (0, Hp - H))).reshape(Hp, 3 * Hp)
    bh_p = jnp.pad(bh.reshape(1, 3, H),
                   ((0, 0), (0, 0), (0, Hp - H))).reshape(1, 3 * Hp)
    return wh_p, bh_p


@functools.partial(jax.jit, static_argnames=("batch_tile",))
def gru_ode_forward(x, h, wx, bx, wh, bh, *, batch_tile=512):
    """Forward of GRUODEfunc.

    x, wx, bx are accepted for interface parity with the module, but the
    reference output depends only on h / wh / bh (gate_x is dead), so they are
    deliberately NOT passed to the kernel.
    """
    del x, wx, bx  # dead in the reference forward

    B, H = h.shape
    Hp = _round_up(H, 128)   # lane-dense gate/output width
    wh_p, bh_p = _pad_params(wh, bh, H, Hp)

    if B <= batch_tile:
        # Gridless single invocation: no pipeline bookkeeping.
        Bp = _round_up(B, 8)
        h_p = jnp.pad(h, ((0, Bp - B), (0, Hp - H)))
        out_p = pl.pallas_call(
            gru_ode_kernel,
            out_shape=jax.ShapeDtypeStruct((Bp, Hp), h.dtype),
            in_specs=[
                pl.BlockSpec(memory_space=pltpu.MemorySpace.VMEM),
                pl.BlockSpec(memory_space=pltpu.MemorySpace.VMEM),
                pl.BlockSpec(memory_space=pltpu.MemorySpace.VMEM),
            ],
            out_specs=pl.BlockSpec(memory_space=pltpu.MemorySpace.VMEM),
        )(h_p, wh_p, bh_p)
    else:
        # Large batch: tile over batch with a parallel grid. Weight / bias
        # block indices are constant -> they stay resident in VMEM while the
        # h tiles are double-buffered by the auto-pipeline.
        bt = batch_tile
        Bp = _round_up(B, bt)
        h_p = jnp.pad(h, ((0, Bp - B), (0, Hp - H)))
        out_p = pl.pallas_call(
            gru_ode_kernel,
            out_shape=jax.ShapeDtypeStruct((Bp, Hp), h.dtype),
            grid=(Bp // bt,),
            in_specs=[
                pl.BlockSpec((bt, Hp), lambda i: (i, 0)),
                pl.BlockSpec((Hp, 3 * Hp), lambda i: (0, 0)),
                pl.BlockSpec((1, 3 * Hp), lambda i: (0, 0)),
            ],
            out_specs=pl.BlockSpec((bt, Hp), lambda i: (i, 0)),
            compiler_params=pltpu.CompilerParams(
                dimension_semantics=("parallel",)),
        )(h_p, wh_p, bh_p)

    return out_p[:B, :H]


def gru_ode_reference(x, h, wx, bx, wh, bh):
    """Pure-JAX reference of the (intended) PyTorch forward."""
    H = h.shape[1]
    gate_h = h @ wh + bh
    h_r, h_i, h_n = gate_h[:, :H], gate_h[:, H:2 * H], gate_h[:, 2 * H:]
    r = jax.nn.sigmoid(h_r)
    z = jax.nn.sigmoid(h_i)
    n = jnp.tanh(r * h_n)
    return (1.0 - z) * h + z * n


def init_params(key, input_size, hidden_size):
    """nn.Linear-style init: U(-1/sqrt(fan_in), 1/sqrt(fan_in))."""
    k1, k2, k3, k4 = jax.random.split(key, 4)
    G = 3 * hidden_size
    bx_bound = 1.0 / math.sqrt(input_size)
    bh_bound = 1.0 / math.sqrt(hidden_size)
    wx = jax.random.uniform(k1, (input_size, G), jnp.float32, -bx_bound, bx_bound)
    bx = jax.random.uniform(k2, (1, G), jnp.float32, -bx_bound, bx_bound)
    wh = jax.random.uniform(k3, (hidden_size, G), jnp.float32, -bh_bound, bh_bound)
    bh = jax.random.uniform(k4, (1, G), jnp.float32, -bh_bound, bh_bound)
    return wx, bx, wh, bh


if __name__ == "__main__":
    B, INPUT_SIZE, HIDDEN_SIZE = 8, 16, 32

    key = jax.random.PRNGKey(0)
    kx, kh, kp = jax.random.split(key, 3)

    x = jax.random.normal(kx, (B, INPUT_SIZE), jnp.float32)
    h = jax.random.normal(kh, (B, HIDDEN_SIZE), jnp.float32)
    wx, bx, wh, bh = init_params(kp, INPUT_SIZE, HIDDEN_SIZE)

    # Gridless path (typical ODE-solver batch).
    hy = jax.block_until_ready(gru_ode_forward(x, h, wx, bx, wh, bh))
    hy_ref = gru_ode_reference(x, h, wx, bx, wh, bh)
    assert hy.shape == (B, HIDDEN_SIZE)
    assert jnp.allclose(hy, hy_ref, atol=1e-5, rtol=1e-5), "mismatch (gridless path)"

    # Batch-tiled grid path (forced with a tiny tile) — same semantics.
    B2 = 24
    kx2, kh2 = jax.random.split(jax.random.PRNGKey(1))
    x2 = jax.random.normal(kx2, (B2, INPUT_SIZE), jnp.float32)
    h2 = jax.random.normal(kh2, (B2, HIDDEN_SIZE), jnp.float32)
    hy2 = jax.block_until_ready(
        gru_ode_forward(x2, h2, wx, bx, wh, bh, batch_tile=8))
    hy2_ref = gru_ode_reference(x2, h2, wx, bx, wh, bh)
    assert hy2.shape == (B2, HIDDEN_SIZE)
    assert jnp.allclose(hy2, hy2_ref, atol=1e-5, rtol=1e-5), "mismatch (grid path)"

    print("KERNEL_OK")
</pallas_src>

<mosaic_0001>
module attributes {stable_mosaic.version = 11 : i64} {
  func.func @gru_ode_kernel(%arg0: memref<8x128xf32, #tpu.memory_space<vmem>>, %arg1: memref<128x384xf32, #tpu.memory_space<vmem>>, %arg2: memref<1x384xf32, #tpu.memory_space<vmem>>, %arg3: memref<8x128xf32, #tpu.memory_space<vmem>>) attributes {dimension_semantics = [], scalar_prefetch = 0 : i64, scratch_operands = 0 : i64, tpu.core_type = #tpu.core_type<tc>} {
    %c0 = arith.constant 0 : index
    %c0_0 = arith.constant 0 : index
    %0 = vector.load %arg0[%c0, %c0_0] : memref<8x128xf32, #tpu.memory_space<vmem>>, vector<8x128xf32>
    %c0_1 = arith.constant 0 : index
    %c0_2 = arith.constant 0 : index
    %1 = vector.load %arg1[%c0_1, %c0_2] : memref<128x384xf32, #tpu.memory_space<vmem>>, vector<128x384xf32>
    %cst = arith.constant dense<0.000000e+00> : vector<8x384xf32>
    %2 = tpu.matmul %0, %1, %cst {dimension_numbers = #tpu.dot_dimension_numbers<[1], [0], [0], [1], [0, 0, 1, 1], [], []>} : vector<8x128xf32>, vector<128x384xf32>, vector<8x384xf32> -> vector<8x384xf32>
    %c0_3 = arith.constant 0 : index
    %c0_4 = arith.constant 0 : index
    %3 = vector.load %arg2[%c0_3, %c0_4] : memref<1x384xf32, #tpu.memory_space<vmem>>, vector<1x384xf32>
    %4 = vector.broadcast %3 : vector<1x384xf32> to vector<8x384xf32>
    %5 = arith.addf %2, %4 : vector<8x384xf32>
    %6 = vector.extract_strided_slice %5 {offsets = [0, 0], sizes = [8, 128], strides = [1, 1]} : vector<8x384xf32> to vector<8x128xf32>
    %7 = arith.negf %6 : vector<8x128xf32>
    %8 = math.exp %7 : vector<8x128xf32>
    %cst_5 = arith.constant 1.000000e+00 : f32
    %9 = vector.broadcast %cst_5 : f32 to vector<8x128xf32>
    %10 = arith.addf %9, %8 : vector<8x128xf32>
    %11 = arith.divf %9, %10 : vector<8x128xf32>
    %12 = vector.extract_strided_slice %5 {offsets = [0, 128], sizes = [8, 128], strides = [1, 1]} : vector<8x384xf32> to vector<8x128xf32>
    %13 = arith.negf %12 : vector<8x128xf32>
    %14 = math.exp %13 : vector<8x128xf32>
    %cst_6 = arith.constant 1.000000e+00 : f32
    %15 = vector.broadcast %cst_6 : f32 to vector<8x128xf32>
    %16 = arith.addf %15, %14 : vector<8x128xf32>
    %17 = arith.divf %15, %16 : vector<8x128xf32>
    %18 = vector.extract_strided_slice %5 {offsets = [0, 256], sizes = [8, 128], strides = [1, 1]} : vector<8x384xf32> to vector<8x128xf32>
    %19 = arith.mulf %11, %18 : vector<8x128xf32>
    %20 = math.tanh %19 : vector<8x128xf32>
    %21 = arith.subf %20, %0 : vector<8x128xf32>
    %22 = arith.mulf %17, %21 : vector<8x128xf32>
    %23 = arith.addf %0, %22 : vector<8x128xf32>
    %c0_7 = arith.constant 0 : index
    %c0_8 = arith.constant 0 : index
    %24 = vector.load %arg3[%c0_7, %c0_8] : memref<8x128xf32, #tpu.memory_space<vmem>>, vector<8x128xf32>
    tpu.vector_store %arg3[%c0_7, %c0_8], %23 {strides = array<i32>} : memref<8x128xf32, #tpu.memory_space<vmem>>, vector<8x128xf32>,
    return
  }
}

</mosaic_0001>

<bundles_post_ra>
// kernel: gru_ode_forward.1
= control target key start
LH: loop header
LB: loop body
LE: loop exit
PB: predicated region body
PF: predicated region fallthrough
CT: control target
= control target key end

     0   :  { %v402_v7 = vmov 0.0|0.0   ;;  %v403_v8 = vmov 0.0   ;;  %vm404_vm0 = vmmov 0   ;;  %s596_s0 = inlined_call_operand.vmem [shape: f32[8,128], index: 0, kind: input, shape index: {}]   ;;  %s597_s1 = inlined_call_operand.vmem [shape: f32[128,384], index: 1, kind: input, shape index: {}]   ;;  %s598_s2 = inlined_call_operand.vmem [shape: f32[1,384], index: 2, kind: input, shape index: {}]   ;;  %s599_s3 = inlined_call_operand.hbm [shape: f32[8,128], index: 3, kind: output, shape index: {}]  }
   0x1   :  { %v17_v0 = vld [vmem:[%s597_s1 + $0x8] sm:$0xff]  ;;  %v20_v1 = vld [vmem:[%s597_s1 + $0x20] sm:$0xff]  ;;  %v19_v4 = vld [vmem:[%s597_s1 + $0x18] sm:$0xff]  ;;  %340 = vmatprep.subr.bf16.mxu1 %v402_v7  ;;  %145 = vmatprep.mubr.f32.mxu0 %v403_v8 }
   0x2   :  { %v16_v2 = vld [vmem:[%s597_s1] sm:$0xff]  ;;  %v308_v3 = vpack.c.bf16 %v20_v1, %v17_v0  ;;  %v23_v5 = vld [vmem:[%s597_s1 + $0x38] sm:$0xff]  ;;  %v26_v6 = vld [vmem:[%s597_s1 + $0x50] sm:$0xff]  ;;  %305 = vmatprep.mubr.msk.f32.mxu1 %vm404_vm0, %v403_v8 }
   0x3   :  { %v310_v9 = vpack.c.bf16 %v19_v4, %v16_v2  ;;  %v312_v10 = vpack.c.bf16 %v26_v6, %v23_v5  ;;  %v22_v11 = vld [vmem:[%s597_s1 + $0x30] sm:$0xff]  ;;  %v25_v12 = vld [vmem:[%s597_s1 + $0x48] sm:$0xff]  ;;  %v32_v14 = vld [vmem:[%s597_s1 + $0x80] sm:$0xff] }
   0x4   :  { %v29_v13 = vld [vmem:[%s597_s1 + $0x68] sm:$0xff]  ;;  %309 = vmatprep.subr.bf16.mxu0 %v308_v3  ;;  %v314_v15 = vpack.c.bf16 %v25_v12, %v22_v11  ;;  %v28_v17 = vld [vmem:[%s597_s1 + $0x60] sm:$0xff]  ;;  %v31_v18 = vld [vmem:[%s597_s1 + $0x78] sm:$0xff] }
   0x5   :  { %311 = vmatpush1.bf16.msra.mxu0 %v310_v9  ;;  %v316_v16 = vpack.c.bf16 %v32_v14, %v29_v13  ;;  %v35_v19 = vld [vmem:[%s597_s1 + $0x98] sm:$0xff]  ;;  %v38_v20 = vld [vmem:[%s597_s1 + $0xb0] sm:$0xff]  ;;  %v318_v21 = vpack.c.bf16 %v31_v18, %v28_v17  ;;  %v37_v24 = vld [vmem:[%s597_s1 + $0xa8] sm:$0xff] }
   0x6   :  { %313 = vmatprep.subr.bf16.mxu0 %v312_v10  ;;  %v34_v22 = vld [vmem:[%s597_s1 + $0x90] sm:$0xff]  ;;  %v320_v23 = vpack.c.bf16 %v38_v20, %v35_v19  ;;  %v21_v26 = vld [vmem:[%s597_s1 + $0x28] sm:$0xff]  ;;  %v44_v28 = vld [vmem:[%s597_s1 + $0xe0] sm:$0xff] }
   0x7   :  { %v18_v25 = vld [vmem:[%s597_s1 + $0x10] sm:$0xff]  ;;  %v41_v27 = vld [vmem:[%s597_s1 + $0xc8] sm:$0xff]  ;;  %v24_v30 = vld [vmem:[%s597_s1 + $0x40] sm:$0xff]  ;;  %v322_v32 = vpack.c.bf16 %v37_v24, %v34_v22 }
   0x8   :  { %v341_v29 = vpack.c.bf16 %v21_v26, %v18_v25  ;;  %v27_v31 = vld [vmem:[%s597_s1 + $0x58] sm:$0xff]  ;;  %v40_v33 = vld [vmem:[%s597_s1 + $0xc0] sm:$0xff]  ;;  %v324_v35 = vpack.c.bf16 %v44_v28, %v41_v27  ;;  %v30_v37 = vld [vmem:[%s597_s1 + $0x70] sm:$0xff] }
   0x9   :  { %315 = vmatpush1.bf16.msra.mxu0 %v314_v15  ;;  %v344_v34 = vpack.c.bf16 %v27_v31, %v24_v30  ;;  %v43_v36 = vld [vmem:[%s597_s1 + $0xd8] sm:$0xff]  ;;  %v33_v38 = vld [vmem:[%s597_s1 + $0x88] sm:$0xff]  ;;  %v50_v40 = vld [vmem:[%s597_s1 + $0x110] sm:$0xff] }
   0xa   :  { %317 = vmatprep.subr.bf16.mxu0 %v316_v16  ;;  %342 = vmatpush3.bf16.msra.mxu1 %v341_v29  ;;  %v47_v39 = vld [vmem:[%s597_s1 + $0xf8] sm:$0xff]  ;;  %v326_v41 = vpack.c.bf16 %v43_v36, %v40_v33  ;;  %v46_v42 = vld [vmem:[%s597_s1 + $0xf0] sm:$0xff]  ;;  %v347_v43 = vpack.c.bf16 %v33_v38, %v30_v37 }
   0xb   :  { %343 = vmatprep.subr.bf16.mxu1 %v402_v7 }
   0xd   :  { %319 = vmatpush1.bf16.msra.mxu0 %v318_v21 }
   0xe   :  { %321 = vmatprep.subr.bf16.mxu0 %v320_v23  ;;  %345 = vmatpush3.bf16.msra.mxu1 %v344_v34 }
  0x11   :  { %323 = vmatpush1.bf16.msra.mxu0 %v322_v32 }
  0x12   :  { %8 = vsyncpa [#allocation3], 0  ;;  %325 = vmatprep.subr.bf16.mxu0 %v324_v35  ;;  %v328_v44 = vpack.c.bf16 %v50_v40, %v47_v39  ;;  %v49_v45 = vld [vmem:[%s597_s1 + $0x108] sm:$0xff]  ;;  %346 = vmatprep.subr.bf16.mxu1 %v402_v7  ;;  %v36_v46 = vld [vmem:[%s597_s1 + $0xa0] sm:$0xff]  ;;  %v66_v12 = vlaneseq }
  0x13   :  { %v39_v47 = vld [vmem:[%s597_s1 + $0xb8] sm:$0xff]  ;;  %v53_v48 = vld [vmem:[%s597_s1 + $0x128] sm:$0xff]  ;;  %v56_v49 = vld [vmem:[%s597_s1 + $0x140] sm:$0xff]  ;;  %v330_v50 = vpack.c.bf16 %v49_v45, %v46_v42  ;;  %348 = vmatpush3.bf16.msra.mxu1 %v347_v43 }
  0x14   :  { %v52_v51 = vld [vmem:[%s597_s1 + $0x120] sm:$0xff]  ;;  %v350_v52 = vpack.c.bf16 %v39_v47, %v36_v46  ;;  %v332_v53 = vpack.c.bf16 %v56_v49, %v53_v48  ;;  %v55_v54 = vld [vmem:[%s597_s1 + $0x138] sm:$0xff]  ;;  %349 = vmatprep.subr.bf16.mxu1 %v402_v7  ;;  %v42_v55 = vld [vmem:[%s597_s1 + $0xd0] sm:$0xff]  ;;  %v67_v13 = vshrl.u32 %v66_v12, 7 }
  0x15   :  { %327 = vmatpush1.bf16.msra.mxu0 %v326_v41  ;;  %v45_v56 = vld [vmem:[%s597_s1 + $0xe8] sm:$0xff]  ;;  %v59_v57 = vld [vmem:[%s597_s1 + $0x158] sm:$0xff]  ;;  %v62_v58 = vld [vmem:[%s597_s1 + $0x170] sm:$0xff]  ;;  %v334_v59 = vpack.c.bf16 %v55_v54, %v52_v51 }
  0x16   :  { %329 = vmatprep.subr.bf16.mxu0 %v328_v44  ;;  %v58_v60 = vld [vmem:[%s597_s1 + $0x150] sm:$0xff]  ;;  %v353_v61 = vpack.c.bf16 %v45_v56, %v42_v55  ;;  %v336_v62 = vpack.c.bf16 %v62_v58, %v59_v57  ;;  %v61_v63 = vld [vmem:[%s597_s1 + $0x168] sm:$0xff]  ;;  %v48_v0 = vld [vmem:[%s597_s1 + $0x100] sm:$0xff]  ;;  %v68_v14 = vsub.s32 0, %v67_v13  ;;  %v72_v18 = vsub.s32 1, %v67_v13 }
  0x17   :  { %351 = vmatpush3.bf16.msra.mxu1 %v350_v52  ;;  %v51_v1 = vld [vmem:[%s597_s1 + $0x118] sm:$0xff]  ;;  %v338_v2 = vpack.c.bf16 %v61_v63, %v58_v60  ;;  %v54_v4 = vld [vmem:[%s597_s1 + $0x130] sm:$0xff]  ;;  %v57_v5 = vld [vmem:[%s597_s1 + $0x148] sm:$0xff]  ;;  %v76_v28 = vsub.s32 2, %v67_v13 }
  0x18   :  { %352 = vmatprep.subr.bf16.mxu1 %v402_v7  ;;  %v356_v3 = vpack.c.bf16 %v51_v1, %v48_v0  ;;  %v15_v6 = vld [vmem:[%s596_s0] sm:$0xff]  ;;  %v359_v8 = vpack.c.bf16 %v57_v5, %v54_v4  ;;  %v63_v10 = vld [vmem:[%s597_s1 + $0x178] sm:$0xff] }
  0x19   :  { %331 = vmatpush1.bf16.msra.mxu0 %v330_v50  ;;  %v60_v9 = vld [vmem:[%s597_s1 + $0x160] sm:$0xff]  ;;  %s405_s1 = smov [#allocation2]  }
  0x1a   :  { %333 = vmatprep.subr.bf16.mxu0 %v332_v53  ;;  %v362_v11 = vpack.c.bf16 %v63_v10, %v60_v9  ;;  %v64_v15 = vld [vmem:[%s598_s2] sm:$0x7]  ;;  %s246_s2 = sshll.u32 %s405_s1, 4  ;;  %s247_s2 = int_to_ptr.vmem [resolvable:$true] %s246_s2 }
  0x1b   :  { %354 = vmatpush3.bf16.msra.mxu1 %v353_v61  ;;  %v69_v16 = vrot.slane %v64_v15, %v68_v14  ;;  %v73_v22 = vrot.slane %v64_v15, %v72_v18  ;;  %v77_v29 = vrot.slane %v64_v15, %v76_v28  ;;  %s378_s30 = scalar_lea.vmem %s247_s2, 128  ;;  %p383_p1 = scmp.lt.s32.totalorder %s247_s2, %s247_s2 }
  0x1c   :  { %355 = vmatprep.subr.bf16.mxu1 %v402_v7  ;;  %p379_p0 = scmp.ne.s32.totalorder %s247_s2, %s378_s30  ;;  %p384_p2 = scmp.lt.s32.totalorder %s378_s30, %s378_s30 }
  0x1d   :  { %335 = vmatpush1.bf16.msra.mxu0 %v334_v59 }
  0x1e   :  { %337 = vmatprep.subr.bf16.mxu0 %v336_v62  ;;  %p385_p3 = por %p384_p2, %p383_p1 }
  0x1f   :  { %357 = vmatpush3.bf16.msra.mxu1 %v356_v3 }
  0x20   :  { %358 = vmatprep.subr.bf16.mxu1 %v402_v7  ;;  %p386_p4 = pnand %p385_p3, %p379_p0 }
  0x21   :  { %339 = vmatpush1.bf16.msra.mxu0 %v338_v2 }
  0x23   :  { %360 = vmatpush3.bf16.msra.mxu1 %v359_v8 }
  0x24   :  { %146 = vmatmul.mubr.f32.vlgmr.msra.gmra.mrb[0].mxu0 %v15_v6  ;;  %361 = vmatprep.subr.bf16.mxu1 %v402_v7 }
  0x27   :  { %363 = vmatpush3.bf16.msra.mxu1 %v362_v11 }
  0x2a   :  { %306 = vmatmul.mubr.f32.vlgmr.msra.gmra.mrb[0].mxu1 %v15_v6 }
  0xf7   :  { %v147_v17 = vpop.f32.mrb[0].mxu0 }
  0xf8   :  { %v148_v19 = vadd.f32 %v147_v17, %v69_v16  ;;  %v149_v20 = vpop.f32.mrb[1].mxu0 }
  0xf9   :  { %v150_v23 = vadd.f32 %v149_v20, %v73_v22 }
  0xfa   :  { %v254_v21 = vmul.f32 -1.442695, %v148_v19 }
  0xfb   :  { %v255_v25 = vmul.f32 -1.442695, %v150_v23 }
  0xfc   :  { %368 = vpow2.f32 %v254_v21 }
  0xfd   :  { %v218_v24 = vpop.f32.mrb[0].mxu1  ;;  %370 = vpow2.f32 %v255_v25 }
  0xfe   :  { %v307_v7 = vpop.f32.mrb[1].mxu1  ;;  %v219_v30 = vadd.f32 %v218_v24, %v77_v29 }
 0x106   :  { %v369_v26 = vpop.eup %368 }
 0x107   :  { %v225_v27 = vadd.f32 1.0, %v369_v26  ;;  %v371_v31 = vpop.eup %370 }
 0x108   :  { %v231_v33 = vadd.f32 1.0, %v371_v31 }
 0x109   :  { %372 = vrcp.f32 %v225_v27 }
 0x113   :  { %v373_v32 = vpop.eup %372 }
 0x114   :  { %v234_v34 = vmul.f32 %v373_v32, %v219_v30 }
 0x116   :  { %374 = vtanh.f32 %v234_v34 }
 0x117   :  { %376 = vrcp.f32 %v231_v33 }
 0x120   :  { %v375_v35 = vpop.eup %374 }
 0x121   :  { %v236_v36 = vsub.f32 %v375_v35, %v15_v6  ;;  %v377_v37 = vpop.eup %376 }
 0x123   :  { %v237_v38 = vmul.f32 %v377_v37, %v236_v36 }
 0x125   :  { %v238_v39 = vadd.f32 %v237_v38, %v15_v6 }
 0x127   :  { %239 = vst [vmem:[#allocation2] sm:$0xff] %v238_v39 }
 0x128   :  { %389 = shalt.err (!%p386_p4)
}
 0x129   :  { %s390_s6 = scalar_lea.hbm %s599_s3, 128 }
 0x12a   :  { %p391_p5 = scmp.ne.s32.totalorder %s599_s3, %s390_s6  ;;  %p394_p6 = scmp.lt.u32.totalorder %s390_s6, %s599_s3 }
 0x12c   :  { %p396_p7 = pnand %p394_p6, %p391_p5 }
 0x12e   :  { %399 = shalt.err (!%p396_p7)
}
 0x12f   :  { %249 = dma.vmem_to_hbm [thread:$0]  %s247_s2, 128, %s599_s3, [#allocation3]  }
 0x130   :  { %400 = dma.done.wait [#allocation3], 128  }
 0x131   :  { %401 = vsyncadd [#allocation3], 4294967168 }
 0x132   :  { %253 = vsyncpa [#allocation3], 1 }

</bundles_post_ra>
